<compile_context>
chip_gen: v7x
topology: tpu7x:2x2x1
jax: 0.10.0
libtpu: 0.0.40
codegen_flags: <defaults>
</compile_context>

<pallas_src>
import functools

import jax
import jax.numpy as jnp
from jax.experimental import pallas as pl
from jax.experimental.pallas import tpu as pltpu

_LANES = 128
_SMALL_INPUT_ELEMS = 1 << 16  # below this, a fused XLA reduction is faster


def _pick_tiling():
    """Generation-aware tile cap / VMEM budget / 2-TensorCore flag."""
    try:
        kind = jax.devices()[0].device_kind.lower()
    except Exception:  # pragma: no cover - no devices at trace time
        kind = ""
    if "v5" in kind or "v6" in kind:
        # 128 MiB physical VMEM: 8 MiB/input tile, 32 MiB double-buffered.
        return 16384, 64 * 1024 * 1024, False
    if "7" in kind:
        # v7x: 64 MiB physical VMEM, 2 TensorCores per chip.
        return 8192, 32 * 1024 * 1024, True
    # Unknown / older generations: stay conservative.
    return 4096, 32 * 1024 * 1024, False


def _combined_loss_kernel(p_ref, t_ref, o_ref, *, block_rows, n_red,
                          chunk_rows, valid_rows, needs_mask):
    """Accumulates per-lane partial sums of (p-t)^2 + |p-t| into o_ref."""
    p = pl.program_id(0)
    r = pl.program_id(1)

    @pl.when(r == 0)
    def _():
        o_ref[...] = jnp.zeros_like(o_ref)

    # Intended (un-clamped) first global row of this block; only used to mask
    # rows past the end of the data on partial / clamped boundary blocks.
    base_row = (p * n_red + r) * block_rows
    if needs_mask:
        row_iota = jax.lax.broadcasted_iota(jnp.int32, (chunk_rows, _LANES), 0)

    def chunk(c, acc):
        i = c * chunk_rows
        if not isinstance(c, int):
            i = pl.multiple_of(i, chunk_rows)
        d = (p_ref[pl.ds(i, chunk_rows), :].astype(jnp.float32)
             - t_ref[pl.ds(i, chunk_rows), :].astype(jnp.float32))
        contrib = d * d + jnp.abs(d)  # MSE + L1 numerators share the same 1/N
        if needs_mask:
            contrib = jnp.where(base_row + i + row_iota < valid_rows,
                                contrib, 0.0)
        if chunk_rows == 8:
            return acc + contrib
        return acc + jnp.sum(contrib.reshape(-1, 8, _LANES), axis=0)

    n_chunks = block_rows // chunk_rows
    acc0 = jnp.zeros((8, _LANES), jnp.float32)
    if n_chunks <= 8:
        acc = acc0
        for c in range(n_chunks):
            acc = chunk(c, acc)
    else:
        unroll = 8 if n_chunks % 8 == 0 else 1
        acc = jax.lax.fori_loop(0, n_chunks, chunk, acc0, unroll=unroll)

    o_ref[...] += acc


def combined_loss(pred: jax.Array, target: jax.Array, *,
                  force_pallas: bool = False) -> jax.Array:
    """MSE(pred, target) + L1(pred, target), both with 'mean' reduction."""
    assert pred.shape == target.shape, (pred.shape, target.shape)
    total = int(pred.size)

    # Small-input fast path: launch overhead would dominate the kernel.
    if total < _SMALL_INPUT_ELEMS and not force_pallas:
        d = pred.astype(jnp.float32) - target.astype(jnp.float32)
        return jnp.mean(d * d) + jnp.mean(jnp.abs(d))

    itemsize = pred.dtype.itemsize
    pack = max(1, 4 // itemsize)      # sublane packing factor (bf16 -> 2)
    chunk_rows = 8 * pack             # rows per inner-loop step
    max_rows, vmem_limit, two_core = _pick_tiling()

    # Lane-dense (rows, 128) view.  Pad by AT MOST one (chunk_rows, 128) tile
    # and only when misaligned — never a slab-sized full-tensor copy.
    row_quant = chunk_rows * _LANES
    padded_total = pl.cdiv(total, row_quant) * row_quant
    p_flat = pred.reshape(-1)
    t_flat = target.reshape(-1)
    if padded_total != total:
        pad = padded_total - total    # < chunk_rows * 128 elements
        p_flat = jnp.pad(p_flat, (0, pad))   # zeros contribute 0 to both sums
        t_flat = jnp.pad(t_flat, (0, pad))
    rows = padded_total // _LANES
    p2 = p_flat.reshape(rows, _LANES)
    t2 = t_flat.reshape(rows, _LANES)

    block_rows = min(max_rows, rows)          # multiple of chunk_rows
    nb = pl.cdiv(rows, block_rows)            # number of (maybe partial) blocks
    want_par = 2 if (two_core and nb >= 2) else 1

    def launch(n_par):
        n_red = pl.cdiv(nb, n_par)
        # Mask needed iff the grid covers more rows than the array holds
        # (partial boundary block, or clamped duplicate block on core 1).
        needs_mask = (n_par * n_red * block_rows) != rows
        in_map = lambda i, r: (jnp.minimum(i * n_red + r, nb - 1), 0)
        kernel = functools.partial(
            _combined_loss_kernel, block_rows=block_rows, n_red=n_red,
            chunk_rows=chunk_rows, valid_rows=rows, needs_mask=needs_mask)
        return pl.pallas_call(
            kernel,
            out_shape=jax.ShapeDtypeStruct((n_par * 8, _LANES), jnp.float32),
            grid_spec=pltpu.PrefetchScalarGridSpec(
                num_scalar_prefetch=0,
                grid=(n_par, n_red),
                in_specs=[pl.BlockSpec((block_rows, _LANES), in_map),
                          pl.BlockSpec((block_rows, _LANES), in_map)],
                out_specs=pl.BlockSpec((8, _LANES), lambda i, r: (i, 0)),
            ),
            compiler_params=pltpu.CompilerParams(
                dimension_semantics=(
                    pltpu.CORE_PARALLEL if n_par == 2 else pltpu.ARBITRARY,
                    pltpu.ARBITRARY),
                vmem_limit_bytes=vmem_limit,
            ),
        )(p2, t2)

    if want_par == 2:
        try:
            partials = launch(2)
        except Exception:
            # Conservative fallback if the 2-TensorCore split fails to lower.
            partials = launch(1)
    else:
        partials = launch(1)

    # Mean reduction uses the UNPADDED element count.
    return jnp.sum(partials) / jnp.float32(total)


if __name__ == "__main__":
    key = jax.random.PRNGKey(0)
    k1, k2, k3, k4 = jax.random.split(key, 4)

    def ref_loss(p, t):
        d = p.astype(jnp.float32) - t.astype(jnp.float32)
        return jnp.mean(d * d) + jnp.mean(jnp.abs(d))

    # Small NCHW inputs consistent with a typical loss-module forward.
    pred = jax.random.normal(k1, (2, 4, 16, 16), dtype=jnp.float32)
    target = jax.random.normal(k2, (2, 4, 16, 16), dtype=jnp.float32)
    loss = combined_loss(pred, target, force_pallas=True)   # run the kernel
    jax.block_until_ready(loss)
    assert jnp.allclose(loss, ref_loss(pred, target), rtol=1e-5, atol=1e-5), (
        loss, ref_loss(pred, target))

    # Non-lane-aligned shape: exercises the (tiny, <1024-element) tail pad.
    pred2 = jax.random.normal(k3, (2, 3, 7, 5), dtype=jnp.float32)
    target2 = jax.random.normal(k4, (2, 3, 7, 5), dtype=jnp.float32)
    loss2 = combined_loss(pred2, target2, force_pallas=True)
    jax.block_until_ready(loss2)
    assert jnp.allclose(loss2, ref_loss(pred2, target2), rtol=1e-5, atol=1e-5)

    # bf16 inputs (halves HBM traffic; kernel upcasts to f32 internally).
    pb, tb = pred.astype(jnp.bfloat16), target.astype(jnp.bfloat16)
    loss3 = combined_loss(pb, tb, force_pallas=True)
    jax.block_until_ready(loss3)
    assert jnp.allclose(loss3, ref_loss(pb, tb), rtol=1e-3, atol=1e-3)

    # Moderate multi-block shape: exercises the multi-step reduction and the
    # in-kernel boundary mask on every generation (auto Pallas path).
    pred4 = jax.random.normal(k1, (4, 8, 288, 288), dtype=jnp.float32)
    target4 = jax.random.normal(k2, (4, 8, 288, 288), dtype=jnp.float32)
    loss4 = combined_loss(pred4, target4)
    jax.block_until_ready(loss4)
    assert jnp.allclose(loss4, ref_loss(pred4, target4), rtol=1e-4, atol=1e-4)

    # Tiny-shape fast path (no Pallas launch).
    loss5 = combined_loss(pred2, target2)
    jax.block_until_ready(loss5)
    assert jnp.allclose(loss5, ref_loss(pred2, target2), rtol=1e-5, atol=1e-5)

    print("KERNEL_OK")
</pallas_src>

<mosaic_0001>
module attributes {stable_mosaic.version = 11 : i64} {
  func.func @_combined_loss_kernel(%arg0: i32, %arg1: i32, %arg2: memref<16x128xf32, #tpu.memory_space<vmem>>, %arg3: memref<16x128xf32, #tpu.memory_space<vmem>>, %arg4: memref<8x128xf32, #tpu.memory_space<vmem>>) attributes {dimension_semantics = [#tpu.dimension_semantics<arbitrary>, #tpu.dimension_semantics<arbitrary>], iteration_bounds = array<i64: 1, 1>, scalar_prefetch = 0 : i64, scratch_operands = 0 : i64, tpu.core_type = #tpu.core_type<tc>, window_params = [{transform_indices = @transform_0, window_bounds = array<i64: 16, 128>}, {transform_indices = @transform_1, window_bounds = array<i64: 16, 128>}, {transform_indices = @transform_2, window_bounds = array<i64: 8, 128>}]} {
    %c0_i32 = arith.constant 0 : i32
    %0 = arith.cmpi eq, %arg1, %c0_i32 : i32
    %1 = arith.extui %0 : i1 to i32
    %c0_i32_0 = arith.constant 0 : i32
    %2 = arith.cmpi ne, %1, %c0_i32_0 : i32
    scf.if %2 {
      %cst_11 = arith.constant 0.000000e+00 : f32
      %21 = vector.broadcast %cst_11 : f32 to vector<8x128xf32>
      %c0_12 = arith.constant 0 : index
      %c0_13 = arith.constant 0 : index
      %22 = vector.load %arg4[%c0_12, %c0_13] : memref<8x128xf32, #tpu.memory_space<vmem>>, vector<8x128xf32>
      tpu.vector_store %arg4[%c0_12, %c0_13], %21 {strides = array<i32>} : memref<8x128xf32, #tpu.memory_space<vmem>>, vector<8x128xf32>,
    } else {
    }
    %cst = arith.constant 0.000000e+00 : f32
    %3 = vector.broadcast %cst : f32 to vector<8x128xf32>
    %c0 = arith.constant 0 : index
    %c0_1 = arith.constant 0 : index
    %4 = vector.load %arg2[%c0, %c0_1] : memref<16x128xf32, #tpu.memory_space<vmem>>, vector<8x128xf32>
    %c0_2 = arith.constant 0 : index
    %c0_3 = arith.constant 0 : index
    %5 = vector.load %arg3[%c0_2, %c0_3] : memref<16x128xf32, #tpu.memory_space<vmem>>, vector<8x128xf32>
    %6 = arith.subf %4, %5 : vector<8x128xf32>
    %7 = arith.mulf %6, %6 : vector<8x128xf32>
    %8 = math.absf %6 : vector<8x128xf32>
    %9 = arith.addf %7, %8 : vector<8x128xf32>
    %10 = arith.addf %3, %9 : vector<8x128xf32>
    %c8 = arith.constant 8 : index
    %c0_4 = arith.constant 0 : index
    %11 = vector.load %arg2[%c8, %c0_4] : memref<16x128xf32, #tpu.memory_space<vmem>>, vector<8x128xf32>
    %c8_5 = arith.constant 8 : index
    %c0_6 = arith.constant 0 : index
    %12 = vector.load %arg3[%c8_5, %c0_6] : memref<16x128xf32, #tpu.memory_space<vmem>>, vector<8x128xf32>
    %13 = arith.subf %11, %12 : vector<8x128xf32>
    %14 = arith.mulf %13, %13 : vector<8x128xf32>
    %15 = math.absf %13 : vector<8x128xf32>
    %16 = arith.addf %14, %15 : vector<8x128xf32>
    %17 = arith.addf %10, %16 : vector<8x128xf32>
    %c0_7 = arith.constant 0 : index
    %c0_8 = arith.constant 0 : index
    %18 = vector.load %arg4[%c0_7, %c0_8] : memref<8x128xf32, #tpu.memory_space<vmem>>, vector<8x128xf32>
    %19 = arith.addf %18, %17 : vector<8x128xf32>
    %c0_9 = arith.constant 0 : index
    %c0_10 = arith.constant 0 : index
    %20 = vector.load %arg4[%c0_9, %c0_10] : memref<8x128xf32, #tpu.memory_space<vmem>>, vector<8x128xf32>
    tpu.vector_store %arg4[%c0_9, %c0_10], %19 {strides = array<i32>} : memref<8x128xf32, #tpu.memory_space<vmem>>, vector<8x128xf32>,
    return
  }
  func.func @transform_0(%arg0: i32, %arg1: i32) -> (i32, i32) {
    %c1_i32 = arith.constant 1 : i32
    %0 = arith.muli %arg0, %c1_i32 : i32
    %1 = arith.addi %0, %arg1 : i32
    %c0_i32 = arith.constant 0 : i32
    %2 = arith.minsi %1, %c0_i32 : i32
    %c0_i32_0 = arith.constant 0 : i32
    %c0_i32_1 = arith.constant 0 : i32
    return %2, %c0_i32_0 : i32, i32
  }
  func.func @transform_1(%arg0: i32, %arg1: i32) -> (i32, i32) {
    %c1_i32 = arith.constant 1 : i32
    %0 = arith.muli %arg0, %c1_i32 : i32
    %1 = arith.addi %0, %arg1 : i32
    %c0_i32 = arith.constant 0 : i32
    %2 = arith.minsi %1, %c0_i32 : i32
    %c0_i32_0 = arith.constant 0 : i32
    %c0_i32_1 = arith.constant 0 : i32
    return %2, %c0_i32_0 : i32, i32
  }
  func.func @transform_2(%arg0: i32, %arg1: i32) -> (i32, i32) {
    %c0_i32 = arith.constant 0 : i32
    %c0_i32_0 = arith.constant 0 : i32
    return %arg0, %c0_i32 : i32, i32
  }
}

</mosaic_0001>

<bundles_post_ra>
// kernel: tpu_custom_call.1
= control target key start
LH: loop header
LB: loop body
LE: loop exit
PB: predicated region body
PF: predicated region fallthrough
CT: control target
= control target key end

     0   :  { %7 = vsyncpa [#allocation3], 0  ;;  %s236_s0 = inlined_call_operand.hbm [shape: f32[16,128], index: 0, kind: input, shape index: {}]   ;;  %s237_s1 = inlined_call_operand.hbm [shape: f32[16,128], index: 1, kind: input, shape index: {}]   ;;  %s238_s2 = inlined_call_operand.hbm [shape: f32[8,128], index: 2, kind: output, shape index: {}]  }
   0x1   :  { %8 = vsyncpa [#allocation6], 0 }
   0x2   :  { %9 = vsyncpa [#allocation4], 0  ;;  %s180_s9 = smov [#allocation2]   ;;  %s108_s13 = scalar_lea.hbm %s236_s0, 256 }
   0x3   :  { %s21_s10 = sshll.u32 %s180_s9, 4  ;;  %p109_p0 = scmp.ne.s32.totalorder %s236_s0, %s108_s13  ;;  %s22_s10 = int_to_ptr.vmem [resolvable:$true] %s21_s10 }
   0x4   :  { %p112_p1 = scmp.lt.u32.totalorder %s108_s13, %s236_s0 }
   0x6   :  { %p114_p2 = pnand %p112_p1, %p109_p0 }
   0x8   :  { %117 = shalt.err (!%p114_p2)
}
   0x9   :  { %s118_s18 = scalar_lea.vmem %s22_s10, 256  ;;  %p123_p4 = scmp.lt.s32.totalorder %s22_s10, %s22_s10 }
   0xa   :  { %p119_p3 = scmp.ne.s32.totalorder %s22_s10, %s118_s18  ;;  %p124_p5 = scmp.lt.s32.totalorder %s118_s18, %s118_s18 }
   0xc   :  { %p125_p6 = por %p124_p5, %p123_p4 }
   0xe   :  { %p126_p7 = pnand %p125_p6, %p119_p3 }
  0x10   :  { %129 = shalt.err (!%p126_p7)
}
  0x11   :  { %s181_s19 = smov 128   ;;  %s182_s20 = smov 8  }
  0x12   :  { %27 = dma.hbm_to_vmem [thread:$0]  %s236_s0, 256, %s22_s10, [#allocation3], %s181_s19, %s181_s19, %s182_s20  }
  0x13   :  { %s183_s23 = smov [#allocation5]   ;;  %s130_s27 = scalar_lea.hbm %s237_s1, 256 }
  0x14   :  { %s39_s24 = sshll.u32 %s183_s23, 4  ;;  %p131_p8 = scmp.ne.s32.totalorder %s237_s1, %s130_s27  ;;  %s40_s24 = int_to_ptr.vmem [resolvable:$true] %s39_s24 }
  0x15   :  { %p134_p9 = scmp.lt.u32.totalorder %s130_s27, %s237_s1 }
  0x17   :  { %p136_p10 = pnand %p134_p9, %p131_p8 }
  0x19   :  { %139 = shalt.err (!%p136_p10)
}
  0x1a   :  { %s140_s4 = scalar_lea.vmem %s40_s24, 256  ;;  %p145_p12 = scmp.lt.s32.totalorder %s40_s24, %s40_s24 }
  0x1b   :  { %p141_p11 = scmp.ne.s32.totalorder %s40_s24, %s140_s4  ;;  %p146_p13 = scmp.lt.s32.totalorder %s140_s4, %s140_s4 }
  0x1d   :  { %p147_p0 = por %p146_p13, %p145_p12 }
  0x1f   :  { %p148_p1 = pnand %p147_p0, %p141_p11 }
  0x21   :  { %151 = shalt.err (!%p148_p1)
}
  0x22   :  { %45 = dma.hbm_to_vmem [thread:$0]  %s237_s1, 256, %s40_s24, [#allocation6], %s181_s19, %s181_s19, %s182_s20  }
  0x23   :  { %174 = dma.done.wait [#allocation3], 256  }
  0x24   :  { %175 = vsyncadd [#allocation3], 4294967040 }
  0x25   :  { %176 = dma.done.wait [#allocation6], 256  }
  0x26   :  { %177 = vsyncadd [#allocation6], 4294967040  ;;  %v65_v0 = vld [vmem:[#allocation2] sm:$0xff]  ;;  %v66_v1 = vld [vmem:[#allocation5] sm:$0xff]  ;;  %s184_s6 = smov [#allocation7]  }
  0x27   :  { %v72_v2 = vld [vmem:[#allocation2 + $0x8] sm:$0xff]  ;;  %v67_v3 = vsub.f32 %v65_v0, %v66_v1  ;;  %v73_v4 = vld [vmem:[#allocation5 + $0x8] sm:$0xff]  ;;  %s88_s7 = sshll.u32 %s184_s6, 4  ;;  %s89_s7 = int_to_ptr.vmem [resolvable:$true] %s88_s7 }
  0x28   :  { %v74_v5 = vsub.f32 %v72_v2, %v73_v4  ;;  %s152_s1 = scalar_lea.vmem %s89_s7, 128  ;;  %p157_p3 = scmp.lt.s32.totalorder %s89_s7, %s89_s7 }
  0x29   :  { %v68_v6 = vmul.f32 %v67_v3, %v67_v3  ;;  %v69_v7 = vand.u32 2147483647, %v67_v3  ;;  %p153_p2 = scmp.ne.s32.totalorder %s89_s7, %s152_s1  ;;  %p158_p4 = scmp.lt.s32.totalorder %s152_s1, %s152_s1 }
  0x2a   :  { %v75_v8 = vmul.f32 %v74_v5, %v74_v5  ;;  %v76_v9 = vand.u32 2147483647, %v74_v5 }
  0x2b   :  { %v70_v10 = vadd.f32 %v69_v7, %v68_v6  ;;  %p159_p5 = por %p158_p4, %p157_p3 }
  0x2c   :  { %v77_v11 = vadd.f32 %v76_v9, %v75_v8 }
  0x2d   :  { %p160_p6 = pnand %p159_p5, %p153_p2 }
  0x2e   :  { %v78_v12 = vadd.f32 %v77_v11, %v70_v10 }
  0x30   :  { %81 = vst [vmem:[#allocation7] sm:$0xff] %v78_v12 }
  0x31   :  { %163 = shalt.err (!%p160_p6)
}
  0x32   :  { %s164_s10 = scalar_lea.hbm %s238_s2, 128 }
  0x33   :  { %p165_p7 = scmp.ne.s32.totalorder %s238_s2, %s164_s10  ;;  %p168_p8 = scmp.lt.u32.totalorder %s164_s10, %s238_s2 }
  0x35   :  { %p170_p9 = pnand %p168_p8, %p165_p7 }
  0x37   :  { %173 = shalt.err (!%p170_p9)
}
  0x38   :  { %91 = dma.vmem_to_hbm [thread:$0]  %s89_s7, 128, %s238_s2, [#allocation4]  }
  0x39   :  { %178 = dma.done.wait [#allocation4], 128  }
  0x3a   :  { %179 = vsyncadd [#allocation4], 4294967168 }
  0x3b   :  { %95 = vsyncpa [#allocation3], 1 }
  0x3c   :  { %96 = vsyncpa [#allocation6], 1 }
  0x3d   :  { %97 = vsyncpa [#allocation4], 1 }

</bundles_post_ra>
